<compile_context>
chip_gen: v6e
topology: v6e:2x2x1
jax: 0.10.0
libtpu: 0.0.40
codegen_flags: <defaults>
</compile_context>

<pallas_src>
import jax
import jax.numpy as jnp
from jax.experimental import pallas as pl
from jax.experimental.pallas import tpu as pltpu

HIDDEN = 64          # hidden_size == advantage_size == dueling_size == 64
LANES = 128
MAX_TILE = 2048      # VMEM-safe on v5e (16 MiB scoped) and v7x (32 MiB scoped)


def _round_up(n, m):
    return ((n + m - 1) // m) * m


# ----------------------------------------------------------------------------
# Kernel: 4 bf16 matmuls with f32 accumulation; bias-add / ReLU in f32.
# ----------------------------------------------------------------------------
def _value_net_kernel(x_ref,
                      w1_ref, b1_ref,
                      w2_ref, b2_ref,
                      wh1_ref, bh1_ref,
                      wh2_ref, bh2_ref,
                      q_ref):
    bf16 = jnp.bfloat16
    f32 = jnp.float32

    # In-kernel cast of x (VPU has ample slack; saves wrapper-side HBM passes).
    x = x_ref[...].astype(bf16)

    h = jnp.dot(x, w1_ref[...], preferred_element_type=f32)
    h = jnp.maximum(h + b1_ref[...], 0.0).astype(bf16)

    h = jnp.dot(h, w2_ref[...], preferred_element_type=f32)
    h = jnp.maximum(h + b2_ref[...], 0.0).astype(bf16)

    # fused advantage|value first layer: (tb, 64) @ (64, 128)
    h = jnp.dot(h, wh1_ref[...], preferred_element_type=f32)
    h = jnp.maximum(h + bh1_ref[...], 0.0).astype(bf16)

    # fused second layer with the dueling combine folded into the weights:
    #   q = val + adv - mean(adv)  ==  h @ W_c + b_c
    q = jnp.dot(h, wh2_ref[...], preferred_element_type=f32) + bh2_ref[...]
    q_ref[...] = q.astype(q_ref.dtype)


# ----------------------------------------------------------------------------
# One-time weight preparation (hoisted out of the per-call forward path).
# ----------------------------------------------------------------------------
def prepare_weights(params):
    """Fuse heads, fold the dueling mean into the weights, pad output lanes,
    and cast matmul operands to bf16.  Call once per parameter update."""
    f32, bf16 = jnp.float32, jnp.bfloat16
    A = params["wa2"].shape[1]
    num_inputs = params["w1"].shape[0]
    out_pad = _round_up(A, LANES)

    # Fold the dueling mean subtraction into the advantage output weights.
    center = jnp.eye(A, dtype=f32) - jnp.full((A, A), 1.0 / A, dtype=f32)
    wa2_c = params["wa2"].astype(f32) @ center                       # (64, A)
    ba2_c = params["ba2"].astype(f32) @ center                       # (1, A)

    # Fuse advantage|value first layers -> lane-dense (64, 128).
    wh1 = jnp.concatenate([params["wa1"], params["wv1"]], axis=1)     # (64, 128)
    bh1 = jnp.concatenate([params["ba1"], params["bv1"]], axis=1)     # (1, 128)

    # Fuse second layers + "value broadcast over actions" -> (128, A).
    wv2_tiled = params["wv2"].astype(f32) @ jnp.ones((1, A), f32)     # (64, A)
    wh2 = jnp.concatenate([wa2_c, wv2_tiled], axis=0)                 # (128, A)
    bh2 = ba2_c + params["bv2"].astype(f32)                           # (1, A)

    # Pad only the OUTPUT lanes (zeros -> padded q columns are exact zeros).
    wh2_p = jnp.zeros((2 * HIDDEN, out_pad), f32).at[:, :A].set(wh2)
    bh2_p = jnp.zeros((1, out_pad), f32).at[:, :A].set(bh2)

    weights = (params["w1"].astype(bf16), params["b1"].astype(f32),
               params["w2"].astype(bf16), params["b2"].astype(f32),
               wh1.astype(bf16), bh1.astype(f32),
               wh2_p.astype(bf16), bh2_p.astype(f32))
    return weights, A, num_inputs


# ----------------------------------------------------------------------------
# Wrapper: adaptive batch-tiled grid, VMEM-resident weights, lane-dense output.
# ----------------------------------------------------------------------------
def value_network_forward(x, weights, num_actions, *, batch_tile=1024,
                          out_dtype=jnp.float32, return_padded=False):
    B, num_inputs = x.shape
    A = num_actions
    out_pad = weights[6].shape[1]     # padded action-lane width of fused wh2

    # Adaptive tile: keep b_pad - B small, cap tile for VMEM safety, and keep
    # an even step count (>1) so a v7x 2-TensorCore split has balanced work.
    cap = max(8, min(batch_tile, MAX_TILE))
    n_steps = -(-B // cap)
    if n_steps > 1 and n_steps % 2:
        n_steps += 1
    tb = _round_up(-(-B // n_steps), 8)
    b_pad = tb * n_steps

    # Minimal batch-only zero padding (no lane padding, no dtype rewrite of x).
    x_in = x
    if b_pad != B:
        x_in = jnp.zeros((b_pad, num_inputs), x.dtype).at[:B, :].set(x)

    def _resident_spec(shape):
        # Whole array as one block; constant index_map -> DMA'd once,
        # stays resident in VMEM across all batch-grid steps.
        return pl.BlockSpec(shape, lambda i: (0,) * len(shape))

    in_specs = ([pl.BlockSpec((tb, num_inputs), lambda i: (i, 0))]
                + [_resident_spec(w.shape) for w in weights])
    out_specs = pl.BlockSpec((tb, out_pad), lambda i: (i, 0))

    flops = 2 * b_pad * (num_inputs * HIDDEN + HIDDEN * HIDDEN
                         + HIDDEN * 2 * HIDDEN + 2 * HIDDEN * out_pad)
    bytes_accessed = (x_in.size * x_in.dtype.itemsize
                      + b_pad * out_pad * jnp.dtype(out_dtype).itemsize
                      + sum(w.size * w.dtype.itemsize for w in weights))

    q_pad = pl.pallas_call(
        _value_net_kernel,
        out_shape=jax.ShapeDtypeStruct((b_pad, out_pad), out_dtype),
        grid=(b_pad // tb,),
        in_specs=in_specs,
        out_specs=out_specs,
        compiler_params=pltpu.CompilerParams(
            # TODO(synk): verify on v7x that "parallel" actually shards the
            # batch grid across both TensorCores (no-op on v5e/v6e).
            dimension_semantics=("parallel",)),
        cost_estimate=pl.CostEstimate(flops=flops, transcendentals=0,
                                      bytes_accessed=bytes_accessed),
    )(x_in, *weights)

    if return_padded:
        # Columns >= A are exact zeros; rows >= B are garbage -> mask downstream.
        return q_pad
    return q_pad[:B, :A]


# ----------------------------------------------------------------------------
# Params (PyTorch nn.Linear-style init; weights stored (in, out), biases (1, out))
# ----------------------------------------------------------------------------
def init_params(key, num_inputs, num_actions):
    ks = jax.random.split(key, 12)

    def lin(kw, kb, fan_in, fan_out):
        bound = 1.0 / jnp.sqrt(fan_in)
        w = jax.random.uniform(kw, (fan_in, fan_out), jnp.float32, -bound, bound)
        b = jax.random.uniform(kb, (1, fan_out), jnp.float32, -bound, bound)
        return w, b

    w1, b1 = lin(ks[0], ks[1], num_inputs, HIDDEN)
    w2, b2 = lin(ks[2], ks[3], HIDDEN, HIDDEN)
    wa1, ba1 = lin(ks[4], ks[5], HIDDEN, HIDDEN)
    wa2, ba2 = lin(ks[6], ks[7], HIDDEN, num_actions)
    wv1, bv1 = lin(ks[8], ks[9], HIDDEN, HIDDEN)
    wv2, bv2 = lin(ks[10], ks[11], HIDDEN, 1)
    return dict(w1=w1, b1=b1, w2=w2, b2=b2,
                wa1=wa1, ba1=ba1, wa2=wa2, ba2=ba2,
                wv1=wv1, bv1=bv1, wv2=wv2, bv2=bv2)


# ----------------------------------------------------------------------------
# References
# ----------------------------------------------------------------------------
def reference_forward(x, p):
    """Pure-f32 JAX reference mirroring the PyTorch forward (dueling=True)."""
    relu = lambda t: jnp.maximum(t, 0.0)
    h = relu(x @ p["w1"] + p["b1"])
    h = relu(h @ p["w2"] + p["b2"])
    adv = relu(h @ p["wa1"] + p["ba1"]) @ p["wa2"] + p["ba2"]
    val = relu(h @ p["wv1"] + p["bv1"]) @ p["wv2"] + p["bv2"]
    return val + adv - adv.mean(axis=1, keepdims=True)


def matched_reference(x, params):
    """Pure-JAX run of the exact kernel math (same fusion / bf16 precision)."""
    weights, A, _ = prepare_weights(params)
    w1, b1, w2, b2, wh1, bh1, wh2, bh2 = weights
    f32, bf16 = jnp.float32, jnp.bfloat16
    h = jnp.maximum(jnp.dot(x.astype(bf16), w1, preferred_element_type=f32) + b1,
                    0.0).astype(bf16)
    h = jnp.maximum(jnp.dot(h, w2, preferred_element_type=f32) + b2, 0.0).astype(bf16)
    h = jnp.maximum(jnp.dot(h, wh1, preferred_element_type=f32) + bh1, 0.0).astype(bf16)
    q = jnp.dot(h, wh2, preferred_element_type=f32) + bh2
    return q[:, :A]


if __name__ == "__main__":
    key = jax.random.PRNGKey(0)
    k_x, k_p = jax.random.split(key)

    B, num_inputs, num_actions = 64, 32, 8
    x = jax.random.normal(k_x, (B, num_inputs), dtype=jnp.float32)
    params = init_params(k_p, num_inputs, num_actions)

    # Weight fusion / padding / casts done ONCE (hoisted out of the hot path).
    weights, A, _ = prepare_weights(params)

    # batch_tile=32 -> a 2-step "parallel" batch grid even at this demo size.
    q = value_network_forward(x, weights, A, batch_tile=32)
    q = jax.block_until_ready(q)
    assert q.shape == (B, num_actions)

    # Tight check: Pallas kernel vs identical-precision pure-JAX math.
    q_matched = matched_reference(x, params)
    assert jnp.allclose(q, q_matched, atol=1e-3, rtol=1e-3), \
        "mismatch vs kernel-math (bf16) reference"

    # Looser check vs the f32 PyTorch-equivalent forward (bf16 matmul rounding).
    q_f32 = reference_forward(x, params)
    assert jnp.allclose(q, q_f32, atol=5e-2, rtol=5e-2), \
        "mismatch vs f32 reference"

    print("KERNEL_OK")
</pallas_src>

<mosaic_0001>
module attributes {stable_mosaic.version = 11 : i64} {
  func.func @_value_net_kernel(%arg0: i32, %arg1: memref<32x32xf32, #tpu.memory_space<vmem>>, %arg2: memref<32x64xbf16, #tpu.memory_space<vmem>>, %arg3: memref<1x64xf32, #tpu.memory_space<vmem>>, %arg4: memref<64x64xbf16, #tpu.memory_space<vmem>>, %arg5: memref<1x64xf32, #tpu.memory_space<vmem>>, %arg6: memref<64x128xbf16, #tpu.memory_space<vmem>>, %arg7: memref<1x128xf32, #tpu.memory_space<vmem>>, %arg8: memref<128x128xbf16, #tpu.memory_space<vmem>>, %arg9: memref<1x128xf32, #tpu.memory_space<vmem>>, %arg10: memref<32x128xf32, #tpu.memory_space<vmem>>) attributes {dimension_semantics = [#tpu.dimension_semantics<parallel>], iteration_bounds = array<i64: 2>, scalar_prefetch = 0 : i64, scratch_operands = 0 : i64, tpu.core_type = #tpu.core_type<tc>, window_params = [{transform_indices = @transform_0, window_bounds = array<i64: 32, 32>}, {pipeline_mode = #tpu.pipeline_mode<synchronous>, transform_indices = @transform_1, window_bounds = array<i64: 32, 64>}, {pipeline_mode = #tpu.pipeline_mode<synchronous>, transform_indices = @transform_2, window_bounds = array<i64: 1, 64>}, {pipeline_mode = #tpu.pipeline_mode<synchronous>, transform_indices = @transform_3, window_bounds = array<i64: 64, 64>}, {pipeline_mode = #tpu.pipeline_mode<synchronous>, transform_indices = @transform_4, window_bounds = array<i64: 1, 64>}, {pipeline_mode = #tpu.pipeline_mode<synchronous>, transform_indices = @transform_5, window_bounds = array<i64: 64, 128>}, {pipeline_mode = #tpu.pipeline_mode<synchronous>, transform_indices = @transform_6, window_bounds = array<i64: 1, 128>}, {pipeline_mode = #tpu.pipeline_mode<synchronous>, transform_indices = @transform_7, window_bounds = array<i64: 128, 128>}, {pipeline_mode = #tpu.pipeline_mode<synchronous>, transform_indices = @transform_8, window_bounds = array<i64: 1, 128>}, {transform_indices = @transform_9, window_bounds = array<i64: 32, 128>}]} {
    %c0 = arith.constant 0 : index
    %c0_0 = arith.constant 0 : index
    %0 = vector.load %arg1[%c0, %c0_0] : memref<32x32xf32, #tpu.memory_space<vmem>>, vector<32x32xf32>
    %1 = arith.truncf %0 : vector<32x32xf32> to vector<32x32xbf16>
    %c0_1 = arith.constant 0 : index
    %c0_2 = arith.constant 0 : index
    %2 = vector.load %arg2[%c0_1, %c0_2] : memref<32x64xbf16, #tpu.memory_space<vmem>>, vector<32x64xbf16>
    %cst = arith.constant dense<0.000000e+00> : vector<32x64xf32>
    %3 = tpu.matmul %1, %2, %cst {dimension_numbers = #tpu.dot_dimension_numbers<[1], [0], [0], [1], [0, 0, 1, 1], [], []>} : vector<32x32xbf16>, vector<32x64xbf16>, vector<32x64xf32> -> vector<32x64xf32>
    %c0_3 = arith.constant 0 : index
    %c0_4 = arith.constant 0 : index
    %4 = vector.load %arg3[%c0_3, %c0_4] : memref<1x64xf32, #tpu.memory_space<vmem>>, vector<1x64xf32>
    %5 = vector.broadcast %4 : vector<1x64xf32> to vector<32x64xf32>
    %6 = arith.addf %3, %5 : vector<32x64xf32>
    %cst_5 = arith.constant 0.000000e+00 : f32
    %7 = vector.broadcast %cst_5 : f32 to vector<32x64xf32>
    %8 = arith.maximumf %6, %7 : vector<32x64xf32>
    %9 = arith.truncf %8 : vector<32x64xf32> to vector<32x64xbf16>
    %c0_6 = arith.constant 0 : index
    %c0_7 = arith.constant 0 : index
    %10 = vector.load %arg4[%c0_6, %c0_7] : memref<64x64xbf16, #tpu.memory_space<vmem>>, vector<64x64xbf16>
    %cst_8 = arith.constant dense<0.000000e+00> : vector<32x64xf32>
    %11 = tpu.matmul %9, %10, %cst_8 {dimension_numbers = #tpu.dot_dimension_numbers<[1], [0], [0], [1], [0, 0, 1, 1], [], []>} : vector<32x64xbf16>, vector<64x64xbf16>, vector<32x64xf32> -> vector<32x64xf32>
    %c0_9 = arith.constant 0 : index
    %c0_10 = arith.constant 0 : index
    %12 = vector.load %arg5[%c0_9, %c0_10] : memref<1x64xf32, #tpu.memory_space<vmem>>, vector<1x64xf32>
    %13 = vector.broadcast %12 : vector<1x64xf32> to vector<32x64xf32>
    %14 = arith.addf %11, %13 : vector<32x64xf32>
    %cst_11 = arith.constant 0.000000e+00 : f32
    %15 = vector.broadcast %cst_11 : f32 to vector<32x64xf32>
    %16 = arith.maximumf %14, %15 : vector<32x64xf32>
    %17 = arith.truncf %16 : vector<32x64xf32> to vector<32x64xbf16>
    %c0_12 = arith.constant 0 : index
    %c0_13 = arith.constant 0 : index
    %18 = vector.load %arg6[%c0_12, %c0_13] : memref<64x128xbf16, #tpu.memory_space<vmem>>, vector<64x128xbf16>
    %cst_14 = arith.constant dense<0.000000e+00> : vector<32x128xf32>
    %19 = tpu.matmul %17, %18, %cst_14 {dimension_numbers = #tpu.dot_dimension_numbers<[1], [0], [0], [1], [0, 0, 1, 1], [], []>} : vector<32x64xbf16>, vector<64x128xbf16>, vector<32x128xf32> -> vector<32x128xf32>
    %c0_15 = arith.constant 0 : index
    %c0_16 = arith.constant 0 : index
    %20 = vector.load %arg7[%c0_15, %c0_16] : memref<1x128xf32, #tpu.memory_space<vmem>>, vector<1x128xf32>
    %21 = vector.broadcast %20 : vector<1x128xf32> to vector<32x128xf32>
    %22 = arith.addf %19, %21 : vector<32x128xf32>
    %cst_17 = arith.constant 0.000000e+00 : f32
    %23 = vector.broadcast %cst_17 : f32 to vector<32x128xf32>
    %24 = arith.maximumf %22, %23 : vector<32x128xf32>
    %25 = arith.truncf %24 : vector<32x128xf32> to vector<32x128xbf16>
    %c0_18 = arith.constant 0 : index
    %c0_19 = arith.constant 0 : index
    %26 = vector.load %arg8[%c0_18, %c0_19] : memref<128x128xbf16, #tpu.memory_space<vmem>>, vector<128x128xbf16>
    %cst_20 = arith.constant dense<0.000000e+00> : vector<32x128xf32>
    %27 = tpu.matmul %25, %26, %cst_20 {dimension_numbers = #tpu.dot_dimension_numbers<[1], [0], [0], [1], [0, 0, 1, 1], [], []>} : vector<32x128xbf16>, vector<128x128xbf16>, vector<32x128xf32> -> vector<32x128xf32>
    %c0_21 = arith.constant 0 : index
    %c0_22 = arith.constant 0 : index
    %28 = vector.load %arg9[%c0_21, %c0_22] : memref<1x128xf32, #tpu.memory_space<vmem>>, vector<1x128xf32>
    %29 = vector.broadcast %28 : vector<1x128xf32> to vector<32x128xf32>
    %30 = arith.addf %27, %29 : vector<32x128xf32>
    %c0_23 = arith.constant 0 : index
    %c0_24 = arith.constant 0 : index
    %31 = vector.load %arg10[%c0_23, %c0_24] : memref<32x128xf32, #tpu.memory_space<vmem>>, vector<32x128xf32>
    tpu.vector_store %arg10[%c0_23, %c0_24], %30 {strides = array<i32>} : memref<32x128xf32, #tpu.memory_space<vmem>>, vector<32x128xf32>,
    return
  }
  func.func @transform_0(%arg0: i32) -> (i32, i32) {
    %c0_i32 = arith.constant 0 : i32
    %c0_i32_0 = arith.constant 0 : i32
    return %arg0, %c0_i32 : i32, i32
  }
  func.func @transform_1(%arg0: i32) -> (i32, i32) {
    %c0_i32 = arith.constant 0 : i32
    %c0_i32_0 = arith.constant 0 : i32
    %c0_i32_1 = arith.constant 0 : i32
    return %c0_i32, %c0_i32_0 : i32, i32
  }
  func.func @transform_2(%arg0: i32) -> (i32, i32) {
    %c0_i32 = arith.constant 0 : i32
    %c0_i32_0 = arith.constant 0 : i32
    %c0_i32_1 = arith.constant 0 : i32
    return %c0_i32, %c0_i32_0 : i32, i32
  }
  func.func @transform_3(%arg0: i32) -> (i32, i32) {
    %c0_i32 = arith.constant 0 : i32
    %c0_i32_0 = arith.constant 0 : i32
    %c0_i32_1 = arith.constant 0 : i32
    return %c0_i32, %c0_i32_0 : i32, i32
  }
  func.func @transform_4(%arg0: i32) -> (i32, i32) {
    %c0_i32 = arith.constant 0 : i32
    %c0_i32_0 = arith.constant 0 : i32
    %c0_i32_1 = arith.constant 0 : i32
    return %c0_i32, %c0_i32_0 : i32, i32
  }
  func.func @transform_5(%arg0: i32) -> (i32, i32) {
    %c0_i32 = arith.constant 0 : i32
    %c0_i32_0 = arith.constant 0 : i32
    %c0_i32_1 = arith.constant 0 : i32
    return %c0_i32, %c0_i32_0 : i32, i32
  }
  func.func @transform_6(%arg0: i32) -> (i32, i32) {
    %c0_i32 = arith.constant 0 : i32
    %c0_i32_0 = arith.constant 0 : i32
    %c0_i32_1 = arith.constant 0 : i32
    return %c0_i32, %c0_i32_0 : i32, i32
  }
  func.func @transform_7(%arg0: i32) -> (i32, i32) {
    %c0_i32 = arith.constant 0 : i32
    %c0_i32_0 = arith.constant 0 : i32
    %c0_i32_1 = arith.constant 0 : i32
    return %c0_i32, %c0_i32_0 : i32, i32
  }
  func.func @transform_8(%arg0: i32) -> (i32, i32) {
    %c0_i32 = arith.constant 0 : i32
    %c0_i32_0 = arith.constant 0 : i32
    %c0_i32_1 = arith.constant 0 : i32
    return %c0_i32, %c0_i32_0 : i32, i32
  }
  func.func @transform_9(%arg0: i32) -> (i32, i32) {
    %c0_i32 = arith.constant 0 : i32
    %c0_i32_0 = arith.constant 0 : i32
    return %arg0, %c0_i32 : i32, i32
  }
}

</mosaic_0001>

<bundles_post_ra>
// kernel: tpu_custom_call.1
= control target key start
LH: loop header
LB: loop body
LE: loop exit
PB: predicated region body
PF: predicated region fallthrough
CT: control target
= control target key end

     0   :  { %14 = vsyncpa [#allocation3], 0  ;;  %s1457_s0 = inlined_call_operand.vmem [shape: f32[64,32], index: 0, kind: input, shape index: {}]   ;;  %s1458_s1 = inlined_call_operand.hbm [shape: bf16[32,64], index: 1, kind: input, shape index: {}]   ;;  %s1459_s2 = inlined_call_operand.vmem [shape: f32[1,64], index: 2, kind: input, shape index: {}]   ;;  %s1460_s3 = inlined_call_operand.vmem [shape: bf16[64,64], index: 3, kind: input, shape index: {}]   ;;  %s1461_s4 = inlined_call_operand.vmem [shape: f32[1,64], index: 4, kind: input, shape index: {}]   ;;  %s1462_s5 = inlined_call_operand.hbm [shape: bf16[64,128], index: 5, kind: input, shape index: {}]   ;;  %s1463_s6 = inlined_call_operand.vmem [shape: f32[1,128], index: 6, kind: input, shape index: {}]   ;;  %s1464_s7 = inlined_call_operand.vmem [shape: bf16[128,128], index: 7, kind: input, shape index: {}]   ;;  %s1465_s8 = inlined_call_operand.vmem [shape: f32[1,128], index: 8, kind: input, shape index: {}]   ;;  %s1466_s9 = inlined_call_operand.hbm [shape: f32[64,128], index: 9, kind: output, shape index: {}]  }
   0x1   :  { %15 = vsyncpa [#allocation6], 0 }
   0x2   :  { %16 = vsyncpa [#allocation4], 0 }
   0x3   :  { %18 = vsyncpa [#allocation4 + $0x1], 0  ;;  %s1263_s30 = smov 0   ;;  %s1265_s10 = smov 0  }
   0x4   :  { %s1267_s11 = smov 0   ;;  %s1269_s12 = smov 0  }
   0x5 LB: > { %s1284_s13 = sadd.s32 4294967295, %s1204_s12   ;;  %s879_s14 = sadd.s32 4294967294, %s1204_s12   ;;  %s1204_s12 = sphi %s1269_s12, %s1480_s12   ;;  %s1200_s11 = sphi %s1267_s11, %s1479_s11   ;;  %s1196_s10 = sphi %s1265_s10, %s1478_s10   ;;  %s1192_s30 = sphi %s1263_s30, %s1477_s30  }
   0x6   : > { %s1288_s15 = sadd.s32 1, %s1204_s12   ;;  %s225_s16 = sadd.s32 1, %s1200_s11 }
   0x7   : > { %s222_s17 = ssub.s32 %s1204_s12, %s1288_s15  ;;  %p235_p0 = scmp.ne.s32.totalorder %s1200_s11, %s1196_s10 }
   0x8   : > { %p223_p1 = scmp.eq.s32.totalorder %s222_s17, 0  ;;  %p236_p2 = scmp.eq.s32.totalorder %s1284_s13, 1 }
   0x9   : > { %p241_p3 = scmp.ne.s32.totalorder %s1196_s10, %s1192_s30  ;;  %p242_p4 = scmp.eq.s32.totalorder %s879_s14, 1 }
   0xa   : > { %s1299_s18 = scalar_select %p223_p1, %s1200_s11, %s225_s16  }
   0xb   : > { %p1301_p5 = por %p236_p2, %p235_p0  ;;  %p1305_p6 = por %p242_p4, %p241_p3 }
   0xc   : > { %p880_p7 = scmp.ge.s32.totalorder %s1204_s12, 1  ;;  %p249_p8 = scmp.lt.s32.totalorder %s1204_s12, 3 }
   0xd   : > { %s1469_s20 = scalar_select %p1305_p6, 1, 0 }
   0xe   : > { %p1467_p9 = scmp.eq.s32.totalorder %s1284_s13, 0  ;;  %p1312_p10 = pnand %p880_p7, %p249_p8 }
   0xf   : > { %s1206_s22 = smov [#allocation2]   ;;  %s1207_s25 = smov [#allocation5]  }
  0x10   : > { %s261_s23 = sshll.u32 %s1206_s22, 4  ;;  %p1012_p11 = pneg %p1312_p10  ;;  %s262_s23 = int_to_ptr.vmem [resolvable:$true] %s261_s23 }
  0x11   : > { %s283_s26 = sshll.u32 %s1207_s25, 4  ;;  %s1095_s27 = scalar_lea.vmem %s262_s23, 256  ;;  %s284_s26 = int_to_ptr.vmem [resolvable:$true] %s283_s26 }
  0x12   : > { %p1320_p12 = pnand %p1467_p9, %p1012_p11  ;;  %p1096_p0 = scmp.ne.s32.totalorder %s262_s23, %s1095_s27 }
  0x13   : > { %p1103_p3 = scmp.lt.s32.totalorder %s262_s23, %s262_s23  ;;  %p1104_p4 = scmp.lt.s32.totalorder %s1095_s27, %s1095_s27 }
  0x14   : > { %p1086_p13 = pneg %p1320_p12 }
  0x15   : > { %p1105_p7 = por %p1104_p4, %p1103_p3 }
  0x16   : > { %p1098_p1 = pnand %p1096_p0, %p1086_p13 }
  0x18   : > { %p1099_p2 = pneg %p1098_p1 }
  0x1a   : > { %p1106_p8 = pnand %p1105_p7, %p1099_p2 }
  0x1c   : > { %1109 = shalt.err (!%p1106_p8)
}
  0x1d   : > { %s1208_s28 = smov 64   ;;  %s1209_s29 = smov 4  }
  0x1e   : > { %1015 = dma.hbm_to_vmem [thread:$0]  (!%p1320_p12), %s1458_s1, 256, %s262_s23, [#allocation3], %s1208_s28, %s1208_s28, %s1209_s29  }
  0x1f   : > { %s1121_s17 = scalar_lea.vmem %s284_s26, 512  ;;  %p1129_p9 = scmp.lt.s32.totalorder %s284_s26, %s284_s26 }
  0x20   : > { %p1122_p11 = scmp.ne.s32.totalorder %s284_s26, %s1121_s17  ;;  %p1130_p6 = scmp.lt.s32.totalorder %s1121_s17, %s1121_s17 }
  0x22   : > { %p1124_p0 = pnand %p1122_p11, %p1086_p13  ;;  %p1131_p3 = por %p1130_p6, %p1129_p9 }
  0x24   : > { %p1125_p1 = pneg %p1124_p0 }
  0x26   : > { %p1132_p2 = pnand %p1131_p3, %p1125_p1 }
  0x28   : > { %1135 = shalt.err (!%p1132_p2)
}
  0x29   : > { %1018 = dma.hbm_to_vmem [thread:$0]  (!%p1320_p12), %s1462_s5, 512, %s284_s26, [#allocation6], %s1208_s28, %s1208_s28, %s1209_s29  }
  0x2a   : > { %317 = sbr.rel (%p1312_p10) target bundleno = 894 (0x37e), region = 56  ;;  %p1472_p4 = scmp.eq.s32.totalorder (!%p1312_p10), %s1284_s13, 0 }
  0x2f   : > { %1179 = dma.done.wait (%p1472_p4), [#allocation3], 256   ;;  %p1473_p13 = pmov %p1472_p4 }
  0x30   : > { %p1474_p7 = pmov %p1472_p4 }
  0x31   : > { %1181 = vsyncadd (%p1473_p13), [#allocation3], 4294967040 }
  0x32   : > { %1183 = dma.done.wait (%p1474_p7), [#allocation6], 512   ;;  %p1475_p6 = pmov %p1472_p4 }
  0x33   : > { %s888_s23 = sshll.u32 %s1284_s13, 2  ;;  %v1066_v0 = vld [vmem:[#allocation2 + $0x8] sm:$0xff]   ;;  %v1067_v1 = vld [vmem:[#allocation2] sm:$0xff]   ;;  %vm394_vm0 = vcmask 261120   ;;  %v1068_v7 = vld [vmem:[%s1460_s3 + $0x18] sm:$0xff]   ;;  %vm495_vm1 = vcmask 523264  }
  0x34   : > { %1185 = vsyncadd (%p1475_p6), [#allocation6], 4294966784  ;;  %p358_p9 = scmp.lt.s32.totalorder %s888_s23, 7  ;;  %950 = vmatprep.subr.bf16.mxu0 %v1066_v0  ;;  %v1069_v9 = vld [vmem:[%s1460_s3 + $0x10] sm:$0xff]   ;;  %v1070_v10 = vld [vmem:[%s1460_s3 + $0x8] sm:$0xff]   ;;  %s354_s25 = sand.u32 1, %s1196_s10  }
  0x35   : > { %951 = vmatpush3.bf16.msra.mxu0 %v1066_v0  ;;  %v1071_v11 = vld [vmem:[%s1460_s3] sm:$0xff]   ;;  %v1072_v12 = vld [vmem:[#allocation5 + $0x18] sm:$0xff]   ;;  %v1074_v29 = vld [vmem:[#allocation5 + $0x8] sm:$0xff]   ;;  %s923_s28 = sshll.u32 %s1284_s13, 9  ;;  %s1417_s17 = scalar_lea.sflag [#allocation4], %s354_s25 }
  0x36   : > { %s1482_s23 = smov (!%p358_p9, %s888_s23), 7  ;;  %952 = vmatprep.subr.bf16.mxu0 %v1067_v1  ;;  %v890_v15 = vld [vmem:[%s1459_s2] ss:$0 sm:$0xff]  ;;  %v1075_v30 = vld [vmem:[#allocation5] sm:$0xff]   ;;  %v1076_v31 = vld [vmem:[%s1464_s7 + $0x38] sm:$0xff]   ;;  %s1415_s16 = scalar_lea.hbm %s1466_s9, %s923_s28 }
  0x37   : > { %s889_s24 = sshll.u32 %s1482_s23, 3  ;;  %v1073_v28 = vld [vmem:[#allocation5 + $0x10] sm:$0xff]   ;;  %v1077_v32 = vld [vmem:[%s1464_s7 + $0x30] sm:$0xff]   ;;  %982 = vmatprep.subr.bf16.mxu1 %v1076_v31  ;;  %v1078_v33 = vld [vmem:[%s1464_s7 + $0x28] sm:$0xff]   ;;  %s887_s23 = sshll.u32 %s354_s25, 5 }
  0x38   : > { %s361_s27 = scalar_lea.vmem %s1457_s0, %s889_s24  ;;  %983 = vmatpush3.bf16.msra.mxu1 %v1076_v31  ;;  %v1079_v34 = vld [vmem:[%s1464_s7 + $0x20] sm:$0xff]   ;;  %v1080_v35 = vld [vmem:[%s1464_s7 + $0x18] sm:$0xff]   ;;  %v1081_v51 = vld [vmem:[%s1464_s7 + $0x10] sm:$0xff]   ;;  %s356_s21 = scalar_lea.vmem [#allocation7], %s887_s23 }
  0x39   : > { %v365_v2 = vld [vmem:[%s361_s27] sm:$0xff]  ;;  %v366_v3 = vld [vmem:[%s361_s27 + $0x8] sm:$0xff]  ;;  %v367_v4 = vld [vmem:[%s361_s27 + $0x10] sm:$0xff]  ;;  %953 = vmatpush3.bf16.msra.mxu0 %v1067_v1  ;;  %984 = vmatprep.subr.bf16.mxu1 %v1077_v32  ;;  %s1210_s22 = smov [#allocation7]  }
  0x3a   : > { %v369_v5 = vpack.c.bf16 %v366_v3, %v365_v2  ;;  %v368_v6 = vld [vmem:[%s361_s27 + $0x18] sm:$0xff]  ;;  %958 = vmatprep.subr.bf16.mxu0 %v1068_v7  ;;  %v895_v38 = vld [vmem:[%s1461_s4] ss:$0 sm:$0xff]  ;;  %v1082_v52 = vld [vmem:[%s1464_s7 + $0x8] sm:$0xff]   ;;  %s795_s27 = sshll.u32 %s356_s21, 4  ;;  %s1140_s23 = sshll.u32 %s1210_s22, 4  ;;  %s1410_s27 = int_to_ptr.vmem [resolvable:$true] %s795_s27  ;;  %s1141_s23 = int_to_ptr.vmem [resolvable:$false] %s1140_s23 }
  0x3b   : > { %v370_v8 = vpack.c.bf16 %v368_v6, %v367_v4  ;;  %v1083_v53 = vld [vmem:[%s1464_s7] sm:$0xff]   ;;  %s1136_s13 = scalar_lea.vmem %s1410_s27, 512  ;;  %s1142_s24 = scalar_lea.vmem %s1141_s23, 1024 }
  0x3c   : > { %954 = vmatprep.mubr.msk.bf16.mxu0 %vm394_vm0, %v369_v5  ;;  %985 = vmatpush3.bf16.msra.mxu1 %v1077_v32  ;;  %v902_v56 = vld [vmem:[%s1463_s6] ss:$0 sm:$0xff]  ;;  %p1137_p10 = scmp.ne.s32.totalorder %s1410_s27, %s1136_s13  ;;  %p1143_p11 = scmp.lt.s32.totalorder %s1410_s27, %s1141_s23 }
  0x3d   : > { %955 = vmatmul.mubr.msk.bf16.vlgmr.msra.gmra.mxu0 %vm394_vm0, %v370_v8  ;;  %986 = vmatprep.subr.bf16.mxu1 %v1078_v33  ;;  %v909_v5 = vld [vmem:[%s1465_s8] ss:$0 sm:$0xff]  ;;  %p1144_p0 = scmp.lt.s32.totalorder %s1142_s24, %s1136_s13 }
  0x3e   : > { %959 = vmatpush3.bf16.msra.mxu0 %v1068_v7  ;;  %p1138_p12 = pnand %p1137_p10, %p1301_p5 }
  0x3f   : > { %960 = vmatprep.subr.bf16.mxu0 %v1069_v9  ;;  %p1145_p1 = por %p1144_p0, %p1143_p11 }
  0x40   : > { %987 = vmatpush3.bf16.msra.mxu1 %v1078_v33  ;;  %p1139_p8 = pneg %p1138_p12 }
  0x41   : > { %988 = vmatprep.subr.bf16.mxu1 %v1079_v34 }
  0x42   : > { %961 = vmatpush3.bf16.msra.mxu0 %v1069_v9  ;;  %p1146_p3 = pnand %p1145_p1, %p1139_p8 }
  0x43   : > { %962 = vmatprep.subr.bf16.mxu0 %v1070_v10 }
  0x44   : > { %989 = vmatpush3.bf16.msra.mxu1 %v1079_v34 }
  0x45   : > { %990 = vmatprep.subr.bf16.mxu1 %v1080_v35 }
  0x46   : > { %963 = vmatpush3.bf16.msra.mxu0 %v1070_v10 }
  0x47   : > { %964 = vmatprep.subr.bf16.mxu0 %v1071_v11 }
  0x48   : > { %991 = vmatpush3.bf16.msra.mxu1 %v1080_v35 }
  0x49   : > { %992 = vmatprep.subr.bf16.mxu1 %v1081_v51 }
  0x4a   : > { %965 = vmatpush3.bf16.msra.mxu0 %v1071_v11 }
  0x4b   : > { %970 = vmatprep.subr.bf16.mxu0 %v1072_v12 }
  0x4c   : > { %993 = vmatpush3.bf16.msra.mxu1 %v1081_v51 }
  0x4d   : > { %994 = vmatprep.subr.bf16.mxu1 %v1082_v52 }
  0x50   : > { %995 = vmatpush3.bf16.msra.mxu1 %v1082_v52 }
  0x51   : > { %996 = vmatprep.subr.bf16.mxu1 %v1083_v53 }
  0x54   : > { %997 = vmatpush3.bf16.msra.mxu1 %v1083_v53 }
  0xfd   : > { %v956_v13 = vpop.f32.mrf.mxu0 }
  0xfe   : > { %v444_v19 = vadd.f32 %v956_v13, %v890_v15 }
  0xff   : > { %v435_v14 = vpop.f32.mrf.mxu0 }
 0x100   : > { %v436_v17 = vadd.f32 %v890_v15, %v435_v14  ;;  %v452_v25 = vmax.f32 %v444_v19, 0.0 }
 0x101   : > { %v957_v16 = vpop.f32.mrf.mxu0 }
 0x102   : > { %v447_v18 = vadd.f32 %v957_v16, %v890_v15  ;;  %v450_v23 = vmax.f32 %v436_v17, 0.0 }
 0x103   : > { %v438_v20 = vpop.f32.mrf.mxu0 }
 0x104   : > { %v439_v21 = vadd.f32 %v890_v15, %v438_v20  ;;  %v453_v22 = vmax.f32 %v447_v18, 0.0 }
 0x106   : > { %v451_v24 = vmax.f32 %v439_v21, 0.0  ;;  %v455_v27 = vpack.c.bf16 %v453_v22, %v452_v25 }
 0x108   : > { %v454_v26 = vpack.c.bf16 %v451_v24, %v450_v23 }
 0x10a   : > { %966 = vmatprep.mubr.msk.bf16.mxu0 %vm495_vm1, %v454_v26 }
 0x10b   : > { %967 = vmatmul.mubr.msk.bf16.vlgmr.msra.gmra.mxu0 %vm495_vm1, %v455_v27 }
 0x10c   : > { %971 = vmatpush3.bf16.msra.mxu0 %v1072_v12 }
 0x10d   : > { %972 = vmatprep.subr.bf16.mxu0 %v1073_v28 }
 0x110   : > { %973 = vmatpush3.bf16.msra.mxu0 %v1073_v28 }
 0x111   : > { %974 = vmatprep.subr.bf16.mxu0 %v1074_v29 }
 0x114   : > { %975 = vmatpush3.bf16.msra.mxu0 %v1074_v29 }
 0x115   : > { %976 = vmatprep.subr.bf16.mxu0 %v1075_v30 }
 0x118   : > { %977 = vmatpush3.bf16.msra.mxu0 %v1075_v30 }
 0x1cb   : > { %v968_v36 = vpop.f32.mrf.mxu0 }
 0x1cc   : > { %v545_v42 = vadd.f32 %v968_v36, %v895_v38 }
 0x1cd   : > { %v536_v37 = vpop.f32.mrf.mxu0 }
 0x1ce   : > { %v537_v40 = vadd.f32 %v895_v38, %v536_v37  ;;  %v553_v48 = vmax.f32 %v545_v42, 0.0 }
 0x1cf   : > { %v969_v39 = vpop.f32.mrf.mxu0 }
 0x1d0   : > { %v548_v41 = vadd.f32 %v969_v39, %v895_v38  ;;  %v551_v46 = vmax.f32 %v537_v40, 0.0 }
 0x1d1   : > { %v539_v43 = vpop.f32.mrf.mxu0 }
 0x1d2   : > { %v540_v44 = vadd.f32 %v895_v38, %v539_v43  ;;  %v554_v45 = vmax.f32 %v548_v41, 0.0 }
 0x1d4   : > { %v552_v47 = vmax.f32 %v540_v44, 0.0  ;;  %v556_v50 = vpack.c.bf16 %v554_v45, %v553_v48 }
 0x1d6   : > { %v555_v49 = vpack.c.bf16 %v552_v47, %v551_v46 }
 0x1d8   : > { %978 = vmatprep.mubr.msk.bf16.mxu0 %vm495_vm1, %v555_v49 }
 0x1d9   : > { %979 = vmatmul.mubr.msk.bf16.vlgmr.msra.gmra.mxu0 %vm495_vm1, %v556_v50 }
 0x299   : > { %v980_v54 = vpop.f32.mrf.mxu0 }
 0x29a   : > { %v645_v60 = vadd.f32 %v980_v54, %v902_v56 }
 0x29b   : > { %v636_v55 = vpop.f32.mrf.mxu0 }
 0x29c   : > { %v637_v58 = vadd.f32 %v902_v56, %v636_v55  ;;  %v653_v2 = vmax.f32 %v645_v60, 0.0 }
 0x29d   : > { %v981_v57 = vpop.f32.mrf.mxu0 }
 0x29e   : > { %v648_v59 = vadd.f32 %v981_v57, %v902_v56  ;;  %v651_v0 = vmax.f32 %v637_v58, 0.0 }
 0x29f   : > { %v639_v61 = vpop.f32.mrf.mxu0 }
 0x2a0   : > { %v640_v62 = vadd.f32 %v902_v56, %v639_v61  ;;  %v654_v63 = vmax.f32 %v648_v59, 0.0 }
 0x2a2   : > { %v652_v1 = vmax.f32 %v640_v62, 0.0  ;;  %v656_v4 = vpack.c.bf16 %v654_v63, %v653_v2 }
 0x2a4   : > { %v655_v3 = vpack.c.bf16 %v652_v1, %v651_v0 }
 0x2a6   : > { %998 = vmatprep.mubr.bf16.mxu1 %v655_v3 }
 0x2a7   : > { %999 = vmatmul.mubr.bf16.vlgmr.msra.gmra.mxu1 %v656_v4 }
 0x367   : > { %v1000_v6 = vpop.f32.mrf.mxu1 }
 0x368   : > { %v771_v7 = vadd.f32 %v1000_v6, %v909_v5 }
 0x369   : > { %v762_v8 = vpop.f32.mrf.mxu1 }
 0x36a   : > { %779 = vst [vmem:[%s356_s21 + $0x10] sm:$0xff] %v771_v7  ;;  %v763_v9 = vadd.f32 %v909_v5, %v762_v8 }
 0x36b   : > { %v1001_v10 = vpop.f32.mrf.mxu1 }
 0x36c   : > { %777 = vst [vmem:[%s356_s21] sm:$0xff] %v763_v9  ;;  %v774_v11 = vadd.f32 %v1001_v10, %v909_v5 }
 0x36d   : > { %v765_v12 = vpop.f32.mrf.mxu1 }
 0x36e   : > { %780 = vst [vmem:[%s356_s21 + $0x18] sm:$0xff] %v774_v11  ;;  %v766_v13 = vadd.f32 %v909_v5, %v765_v12 }
 0x370   : > { %778 = vst [vmem:[%s356_s21 + $0x8] sm:$0xff] %v766_v13 }
 0x371   : > { %1149 = shalt.err (!%p1146_p3)
}
 0x372   : > { %s1150_s25 = scalar_lea.hbm %s1415_s16, 512  ;;  %s1154_s28 = scalar_lea.hbm %s1466_s9, 1024 }
 0x373   : > { %p1151_p2 = scmp.ne.s32.totalorder %s1415_s16, %s1150_s25  ;;  %p1155_p7 = scmp.lt.s32.totalorder %s1415_s16, %s1466_s9 }
 0x374   : > { %p1156_p6 = scmp.lt.s32.totalorder %s1154_s28, %s1150_s25 }
 0x375   : > { %p1152_p4 = pnand %p1151_p2, %p1301_p5 }
 0x376   : > { %p1157_p9 = por %p1156_p6, %p1155_p7 }
 0x377   : > { %p1153_p13 = pneg %p1152_p4 }
 0x379   : > { %p1158_p10 = pnand %p1157_p9, %p1153_p13 }
 0x37b   : > { %1161 = shalt.err (!%p1158_p10)
}
 0x37c   : > { %s1211_s13 = smov 128   ;;  %s1212_s22 = smov 8  }
 0x37d   : > { %1010 = dma.vmem_to_hbm [thread:$0]  (%p1301_p5), %s1410_s27, 512, %s1415_s16, %s1417_s17, %s1211_s13, %s1211_s13, %s1212_s22  }
 0x37e PF: > { %p1027_p12 = scmp.ge.s32.totalorder %s1204_s12, 2  ;;  %s810_s23 = sand.u32 1, %s1192_s30  }
 0x37f   : > { %p1476_p8 = scmp.ne.s32.totalorder %s1469_s20, 0  ;;  %s811_s24 = scalar_lea.sflag [#allocation4], %s810_s23 }
 0x381   : > { %p1020_p11 = pnand %p1027_p12, %p1476_p8 }
 0x383   : > { %p1021_p0 = pneg %p1020_p11 }
 0x385   : > { %1187 = dma.done.wait (%p1021_p0), %s811_s24, 512  }
 0x386   : > { %1189 = vsyncadd (%p1021_p0), %s811_s24, 4294966784  ;;  %p21_p1 = scmp.ge.s32.totalorder %s1288_s15, 4   ;;  %s1477_s30 = smov %s1196_s10 }
 0x387   : > { %s1478_s10 = smov %s1200_s11  ;;  %s1479_s11 = smov %s1299_s18 }
 0x388   : > { %s1480_s12 = smov %s1288_s15  ;;  %23 = sbr.rel (!%p21_p1) target bundleno = 5 (0x5), region = 100 }
 0x38d   :  { %816 = vsyncpa [#allocation3], 1 }
 0x38e   :  { %818 = vsyncpa [#allocation3 + $0x1], 1 }
 0x38f   :  { %819 = vsyncpa [#allocation6], 1 }
 0x390   :  { %820 = vsyncpa [#allocation4], 1 }
 0x391   :  { %822 = vsyncpa [#allocation4 + $0x1], 1 }

</bundles_post_ra>
